<compile_context>
chip_gen: v7x
topology: tpu7x:2x2x1
jax: 0.10.0
libtpu: 0.0.40
codegen_flags: <defaults>
</compile_context>

<pallas_src>
import functools

import jax
import jax.numpy as jnp
from jax.experimental import pallas as pl
from jax.experimental.pallas import tpu as pltpu


# ---------------------------------------------------------------------------
# In-kernel helpers
# ---------------------------------------------------------------------------
def _dequant(a_ref, target_dtype):
    # int8 -> f32 -> bf16 is lossless for |v| <= 127; the quantization scale is
    # folded into W by the wrapper, so no per-tile scale multiply is needed here.
    return a_ref[...].astype(jnp.float32).astype(target_dtype)


def _epilogue(h, activation, valid_out):
    """h: (tile_n, f_out) f32 logits."""
    if activation == "relu":
        return jnp.maximum(h, 0.0)
    if activation == "log_softmax":
        # Row-wise log_softmax over the first `valid_out` real lanes; padded lanes are
        # masked out of max/sum and zeroed in the output.
        lane = jax.lax.broadcasted_iota(jnp.int32, h.shape, 1)
        valid = lane < valid_out
        neg = jnp.finfo(jnp.float32).min
        m = jnp.max(jnp.where(valid, h, neg), axis=1, keepdims=True)
        e = jnp.where(valid, jnp.exp(h - m), 0.0)
        s = jnp.sum(e, axis=1, keepdims=True)
        return jnp.where(valid, h - m - jnp.log(s), 0.0)
    return h


# ---------------------------------------------------------------------------
# Pallas kernels: one fused GCN layer  out = act(A_hat @ X @ W + b)
# ---------------------------------------------------------------------------
def gcn_layer_oneshot_kernel(a_ref, x_ref, w_ref, b_ref, o_ref, *,
                             activation, valid_out):
    """Grid = (row tiles,) [parallel]. Whole reduction in one step: no accumulator,
    no init/finalize -- used when the A row-slab fits comfortably in VMEM."""
    a = _dequant(a_ref, x_ref.dtype)
    ax = jnp.dot(a, x_ref[...], preferred_element_type=jnp.float32)
    h = jnp.dot(ax.astype(w_ref.dtype), w_ref[...],
                preferred_element_type=jnp.float32) + b_ref[...]
    o_ref[...] = _epilogue(h, activation, valid_out).astype(o_ref.dtype)


def gcn_layer_ktiled_kernel(a_ref, x_ref, w_ref, b_ref, o_ref, acc_ref, *,
                            activation, valid_out):
    """Grid = (row tiles [parallel], K tiles over nodes [arbitrary]).
    acc += A[i,k] @ X[k] with an f32 VMEM accumulator; the feature transform,
    bias and activation run exactly once per row tile in the finalize epilogue."""
    k = pl.program_id(1)

    @pl.when(k == 0)
    def _init():
        acc_ref[...] = jnp.zeros_like(acc_ref)

    a = _dequant(a_ref, x_ref.dtype)
    acc_ref[...] += jnp.dot(a, x_ref[...], preferred_element_type=jnp.float32)

    @pl.when(k == pl.num_programs(1) - 1)
    def _finalize():
        h = jnp.dot(acc_ref[...].astype(w_ref.dtype), w_ref[...],
                    preferred_element_type=jnp.float32) + b_ref[...]
        o_ref[...] = _epilogue(h, activation, valid_out).astype(o_ref.dtype)


# ---------------------------------------------------------------------------
# Tile selection & pallas_call plumbing
# ---------------------------------------------------------------------------
def _choose_tiles(n_pad):
    # Row tile: 256 fills the 256-wide v6e/v7x MXU, but only if >= 2 row tiles remain
    # so the "parallel" axis can still feed both v7x TensorCores; else 128.
    tile_n = 256 if (n_pad % 256 == 0 and n_pad // 256 >= 2) else 128
    # K tile: largest 128-multiple divisor of n_pad up to 2048 (big DMAs for the
    # HBM-bound A stream; collapses the K loop for small graphs).
    tile_k, t = 128, 128
    while t <= min(n_pad, 2048):
        if n_pad % t == 0:
            tile_k = t
        t += 128
    return tile_n, tile_k


def gcn_layer(a_q, x, w, b, *, activation, valid_out, out_dtype):
    n_pad = a_q.shape[0]
    f_in, f_out = w.shape
    assert x.shape == (n_pad, f_in)
    assert n_pad % 128 == 0 and f_in % 128 == 0 and f_out % 128 == 0

    tile_n, tile_k = _choose_tiles(n_pad)
    n_tiles, k_tiles = n_pad // tile_n, n_pad // tile_k

    # VMEM budget derived from the actual footprint (double buffers on inputs/outputs),
    # capped at 48 MiB so it stays inside v7x's 64 MiB physical VMEM.
    est = (2 * tile_n * tile_k * jnp.dtype(a_q.dtype).itemsize
           + 2 * tile_k * f_in * jnp.dtype(x.dtype).itemsize
           + 2 * f_in * f_out * jnp.dtype(w.dtype).itemsize
           + 2 * 8 * f_out * 4
           + 2 * tile_n * f_out * jnp.dtype(out_dtype).itemsize
           + tile_n * f_in * 4)
    vmem_limit = int(min(max(2 * est, 32 * 1024 * 1024), 48 * 1024 * 1024))

    if k_tiles == 1:
        # Small graph: one-shot reduction, no accumulator / init / finalize.
        kernel = functools.partial(gcn_layer_oneshot_kernel,
                                   activation=activation, valid_out=valid_out)
        grid = (n_tiles,)
        in_specs = [
            pl.BlockSpec((tile_n, tile_k), lambda i: (i, 0)),   # A row-slab
            pl.BlockSpec((tile_k, f_in), lambda i: (0, 0)),     # X (full, constant)
            pl.BlockSpec((f_in, f_out), lambda i: (0, 0)),      # W (constant)
            pl.BlockSpec((1, f_out), lambda i: (0, 0)),         # bias
        ]
        out_specs = pl.BlockSpec((tile_n, f_out), lambda i: (i, 0))
        scratch_shapes = []
        dims = ("parallel",)
    else:
        kernel = functools.partial(gcn_layer_ktiled_kernel,
                                   activation=activation, valid_out=valid_out)
        grid = (n_tiles, k_tiles)
        in_specs = [
            pl.BlockSpec((tile_n, tile_k), lambda i, k: (i, k)),  # A tile
            pl.BlockSpec((tile_k, f_in), lambda i, k: (k, 0)),    # X K-slab
            pl.BlockSpec((f_in, f_out), lambda i, k: (0, 0)),     # W (constant)
            pl.BlockSpec((1, f_out), lambda i, k: (0, 0)),        # bias
        ]
        out_specs = pl.BlockSpec((tile_n, f_out), lambda i, k: (i, 0))
        scratch_shapes = [pltpu.VMEM((tile_n, f_in), jnp.float32)]
        dims = ("parallel", "arbitrary")

    return pl.pallas_call(
        kernel,
        out_shape=jax.ShapeDtypeStruct((n_pad, f_out), out_dtype),
        grid_spec=pltpu.PrefetchScalarGridSpec(
            num_scalar_prefetch=0,
            grid=grid,
            in_specs=in_specs,
            out_specs=out_specs,
            scratch_shapes=scratch_shapes,
        ),
        compiler_params=pltpu.CompilerParams(
            dimension_semantics=dims,
            vmem_limit_bytes=vmem_limit,
        ),
    )(a_q, x, w, b)


# ---------------------------------------------------------------------------
# Glue: normalized adjacency, quantization, padding
# ---------------------------------------------------------------------------
def build_normalized_adjacency(edge_index, num_nodes):
    """A_hat = D^-1/2 (A + I) D^-1/2 (symmetric gcn_norm with self-loops).

    Note: duplicate edges collapse to 1 and pre-existing self-loops would be
    double-counted vs. torch_geometric's gcn_norm; fine for simple graphs."""
    src, dst = edge_index[0], edge_index[1]
    a = jnp.zeros((num_nodes, num_nodes), jnp.float32)
    a = a.at[dst, src].set(1.0)                       # message j -> i
    a = a + jnp.eye(num_nodes, dtype=jnp.float32)     # self-loops
    deg = jnp.sum(a, axis=1)
    d_inv_sqrt = jnp.where(deg > 0, 1.0 / jnp.sqrt(deg), 0.0)
    return d_inv_sqrt[:, None] * a * d_inv_sqrt[None, :]


def quantize_adjacency(a_hat):
    """Symmetric int8 quantization with a single global scale.
    TODO(synk): a per-row scale would tighten accuracy on high-degree graphs."""
    amax = jnp.maximum(jnp.max(jnp.abs(a_hat)), 1e-12)
    scale = amax / 127.0
    a_q = jnp.clip(jnp.round(a_hat / scale), -127.0, 127.0).astype(jnp.int8)
    return a_q, scale


def _round_up(v, m):
    return ((v + m - 1) // m) * m


def _pad2(x, rows, cols):
    return jnp.pad(x, ((0, rows - x.shape[0]), (0, cols - x.shape[1])))


# ---------------------------------------------------------------------------
# Full GCN forward
# ---------------------------------------------------------------------------
def gcn_forward(x, edge_index, params, *, quantize_adj=True):
    n, f_in = x.shape
    h_feats = params["w1"].shape[1]
    out_feats = params["w2"].shape[1]

    a_hat = build_normalized_adjacency(edge_index, n)

    # Pad nodes to 128 and feature dims to 128 lanes (zero padding is semantically
    # transparent: padded A rows/cols and padded W/b entries are zero).
    n_pad = _round_up(max(n, 128), 128)
    f_in_pad = _round_up(f_in, 128)
    h_pad = _round_up(h_feats, 128)
    out_pad = _round_up(out_feats, 128)

    a_p = _pad2(a_hat, n_pad, n_pad)
    if quantize_adj:
        a_dev, a_scale = quantize_adjacency(a_p)
    else:
        a_dev, a_scale = a_p.astype(jnp.bfloat16), jnp.float32(1.0)

    x_p = _pad2(x, n_pad, f_in_pad).astype(jnp.bfloat16)
    # Dequantization scale folded into the weights: (s*Aq @ X) @ W == (Aq @ X) @ (s*W).
    w1_p = _pad2(params["w1"] * a_scale, f_in_pad, h_pad).astype(jnp.bfloat16)
    w2_p = _pad2(params["w2"] * a_scale, h_pad, out_pad).astype(jnp.bfloat16)
    b1_p = _pad2(params["b1"].reshape(1, -1).astype(jnp.float32), 1, h_pad)
    b2_p = _pad2(params["b2"].reshape(1, -1).astype(jnp.float32), 1, out_pad)

    # Layer 1 (+ fused relu), intermediate kept in bf16 for the next MXU pass.
    h = gcn_layer(a_dev, x_p, w1_p, b1_p, activation="relu",
                  valid_out=h_pad, out_dtype=jnp.bfloat16)
    # TODO(synk): F.dropout(training=True) omitted -- identity (eval-mode semantics).
    # Layer 2 (+ fused masked row-wise log_softmax epilogue).
    out = gcn_layer(a_dev, h, w2_p, b2_p, activation="log_softmax",
                    valid_out=out_feats, out_dtype=jnp.float32)
    return out[:n, :out_feats]


# ---------------------------------------------------------------------------
# Main
# ---------------------------------------------------------------------------
if __name__ == "__main__":
    N = 200          # pads to 256 nodes -> 2 row tiles of 128, K loop collapses to 1
    IN_FEATS = 8
    H_FEATS = 16
    OUT_FEATS = 4

    key = jax.random.PRNGKey(0)
    k_x, k_w1, k_w2 = jax.random.split(key, 3)

    # Node features.
    x = jax.random.normal(k_x, (N, IN_FEATS), jnp.float32)

    # Deterministic undirected ring graph + a few chords (edges listed both ways).
    src_list, dst_list = [], []
    for i in range(N):
        j = (i + 1) % N
        src_list += [i, j]
        dst_list += [j, i]
    for (i, j) in [(0, 100), (25, 150), (50, 175), (7, 93)]:
        src_list += [i, j]
        dst_list += [j, i]
    edge_index = jnp.array([src_list, dst_list], dtype=jnp.int32)

    # Deterministic parameter init (glorot-ish weights, zero bias like PyG GCNConv).
    def glorot(k, fan_in, fan_out):
        lim = jnp.sqrt(6.0 / (fan_in + fan_out))
        return jax.random.uniform(k, (fan_in, fan_out), jnp.float32, -lim, lim)

    params = {
        "w1": glorot(k_w1, IN_FEATS, H_FEATS),
        "b1": jnp.zeros((H_FEATS,), jnp.float32),
        "w2": glorot(k_w2, H_FEATS, OUT_FEATS),
        "b2": jnp.zeros((OUT_FEATS,), jnp.float32),
    }

    out = jax.block_until_ready(gcn_forward(x, edge_index, params))

    assert out.shape == (N, OUT_FEATS)
    assert bool(jnp.all(jnp.isfinite(out)))
    # rows of log_softmax must exponentiate-sum to 1
    assert bool(jnp.allclose(jnp.sum(jnp.exp(out), axis=1), 1.0, atol=1e-4))

    # Pure-JAX reference mirroring the kernel dataflow: int8 A (scale folded into W),
    # bf16 MXU inputs, f32 accumulation, f32 epilogue.
    a_hat_ref = build_normalized_adjacency(edge_index, N)
    a_q_ref, a_scale_ref = quantize_adjacency(a_hat_ref)
    a_bf = a_q_ref.astype(jnp.float32).astype(jnp.bfloat16)

    def ref_layer(a, xx, w, b):
        ax = jnp.dot(a, xx, preferred_element_type=jnp.float32)
        return jnp.dot(ax.astype(jnp.bfloat16),
                       (w * a_scale_ref).astype(jnp.bfloat16),
                       preferred_element_type=jnp.float32) + b

    h_ref = jnp.maximum(ref_layer(a_bf, x.astype(jnp.bfloat16),
                                  params["w1"], params["b1"]),
                        0.0).astype(jnp.bfloat16)
    logits_ref = ref_layer(a_bf, h_ref, params["w2"], params["b2"])
    ref = jax.nn.log_softmax(logits_ref, axis=1)
    assert bool(jnp.allclose(out, ref, atol=3e-2)), float(jnp.max(jnp.abs(out - ref)))

    print("KERNEL_OK")
</pallas_src>

<mosaic_0001>
module attributes {stable_mosaic.version = 11 : i64} {
  func.func @gcn_layer_oneshot_kernel(%arg0: i32, %arg1: memref<128x256xi8, #tpu.memory_space<vmem>>, %arg2: memref<256x128xbf16, #tpu.memory_space<vmem>>, %arg3: memref<128x128xbf16, #tpu.memory_space<vmem>>, %arg4: memref<1x128xf32, #tpu.memory_space<vmem>>, %arg5: memref<128x128xbf16, #tpu.memory_space<vmem>>) attributes {dimension_semantics = [#tpu.dimension_semantics<parallel>], iteration_bounds = array<i64: 2>, scalar_prefetch = 0 : i64, scratch_operands = 0 : i64, tpu.core_type = #tpu.core_type<tc>, window_params = [{transform_indices = @transform_0, window_bounds = array<i64: 128, 256>}, {pipeline_mode = #tpu.pipeline_mode<synchronous>, transform_indices = @transform_1, window_bounds = array<i64: 256, 128>}, {pipeline_mode = #tpu.pipeline_mode<synchronous>, transform_indices = @transform_2, window_bounds = array<i64: 128, 128>}, {pipeline_mode = #tpu.pipeline_mode<synchronous>, transform_indices = @transform_3, window_bounds = array<i64: 1, 128>}, {transform_indices = @transform_4, window_bounds = array<i64: 128, 128>}]} {
    %c0 = arith.constant 0 : index
    %c0_0 = arith.constant 0 : index
    %0 = vector.load %arg1[%c0, %c0_0] : memref<128x256xi8, #tpu.memory_space<vmem>>, vector<128x256xi8>
    %1 = arith.sitofp %0 : vector<128x256xi8> to vector<128x256xf32>
    %2 = arith.truncf %1 : vector<128x256xf32> to vector<128x256xbf16>
    %c0_1 = arith.constant 0 : index
    %c0_2 = arith.constant 0 : index
    %3 = vector.load %arg2[%c0_1, %c0_2] : memref<256x128xbf16, #tpu.memory_space<vmem>>, vector<256x128xbf16>
    %cst = arith.constant dense<0.000000e+00> : vector<128x128xf32>
    %4 = tpu.matmul %2, %3, %cst {dimension_numbers = #tpu.dot_dimension_numbers<[1], [0], [0], [1], [0, 0, 1, 1], [], []>} : vector<128x256xbf16>, vector<256x128xbf16>, vector<128x128xf32> -> vector<128x128xf32>
    %5 = arith.truncf %4 : vector<128x128xf32> to vector<128x128xbf16>
    %c0_3 = arith.constant 0 : index
    %c0_4 = arith.constant 0 : index
    %6 = vector.load %arg3[%c0_3, %c0_4] : memref<128x128xbf16, #tpu.memory_space<vmem>>, vector<128x128xbf16>
    %cst_5 = arith.constant dense<0.000000e+00> : vector<128x128xf32>
    %7 = tpu.matmul %5, %6, %cst_5 {dimension_numbers = #tpu.dot_dimension_numbers<[1], [0], [0], [1], [0, 0, 1, 1], [], []>} : vector<128x128xbf16>, vector<128x128xbf16>, vector<128x128xf32> -> vector<128x128xf32>
    %c0_6 = arith.constant 0 : index
    %c0_7 = arith.constant 0 : index
    %8 = vector.load %arg4[%c0_6, %c0_7] : memref<1x128xf32, #tpu.memory_space<vmem>>, vector<1x128xf32>
    %9 = vector.broadcast %8 : vector<1x128xf32> to vector<128x128xf32>
    %10 = arith.addf %7, %9 : vector<128x128xf32>
    %cst_8 = arith.constant 0.000000e+00 : f32
    %11 = vector.broadcast %cst_8 : f32 to vector<128x128xf32>
    %12 = arith.maximumf %10, %11 : vector<128x128xf32>
    %13 = arith.truncf %12 : vector<128x128xf32> to vector<128x128xbf16>
    %c0_9 = arith.constant 0 : index
    %c0_10 = arith.constant 0 : index
    %14 = vector.load %arg5[%c0_9, %c0_10] : memref<128x128xbf16, #tpu.memory_space<vmem>>, vector<128x128xbf16>
    tpu.vector_store %arg5[%c0_9, %c0_10], %13 {strides = array<i32>} : memref<128x128xbf16, #tpu.memory_space<vmem>>, vector<128x128xbf16>,
    return
  }
  func.func @transform_0(%arg0: i32) -> (i32, i32) {
    %c0_i32 = arith.constant 0 : i32
    %c0_i32_0 = arith.constant 0 : i32
    return %arg0, %c0_i32 : i32, i32
  }
  func.func @transform_1(%arg0: i32) -> (i32, i32) {
    %c0_i32 = arith.constant 0 : i32
    %c0_i32_0 = arith.constant 0 : i32
    %c0_i32_1 = arith.constant 0 : i32
    return %c0_i32, %c0_i32_0 : i32, i32
  }
  func.func @transform_2(%arg0: i32) -> (i32, i32) {
    %c0_i32 = arith.constant 0 : i32
    %c0_i32_0 = arith.constant 0 : i32
    %c0_i32_1 = arith.constant 0 : i32
    return %c0_i32, %c0_i32_0 : i32, i32
  }
  func.func @transform_3(%arg0: i32) -> (i32, i32) {
    %c0_i32 = arith.constant 0 : i32
    %c0_i32_0 = arith.constant 0 : i32
    %c0_i32_1 = arith.constant 0 : i32
    return %c0_i32, %c0_i32_0 : i32, i32
  }
  func.func @transform_4(%arg0: i32) -> (i32, i32) {
    %c0_i32 = arith.constant 0 : i32
    %c0_i32_0 = arith.constant 0 : i32
    return %arg0, %c0_i32 : i32, i32
  }
}

</mosaic_0001>

<bundles_post_ra>
// kernel: tpu_custom_call.1
= control target key start
LH: loop header
LB: loop body
LE: loop exit
PB: predicated region body
PF: predicated region fallthrough
CT: control target
= control target key end

     0   :  { %9 = vsyncpa [#allocation3], 0  ;;  %s1666_s0 = inlined_call_operand.hbm [shape: s8[256,256], index: 0, kind: input, shape index: {}]   ;;  %s1667_s1 = inlined_call_operand.hbm [shape: bf16[256,128], index: 1, kind: input, shape index: {}]   ;;  %s1668_s2 = inlined_call_operand.hbm [shape: bf16[128,128], index: 2, kind: input, shape index: {}]   ;;  %s1669_s3 = inlined_call_operand.vmem [shape: f32[1,128], index: 3, kind: input, shape index: {}]   ;;  %s1670_s4 = inlined_call_operand.hbm [shape: bf16[256,128], index: 4, kind: output, shape index: {}]  }
   0x1   :  { %11 = vsyncpa [#allocation3 + $0x1], 0 }
   0x2   :  { %12 = vsyncpa [#allocation6], 0 }
   0x3   :  { %13 = vsyncpa [#allocation4], 0 }
   0x4   :  { %15 = vsyncpa [#allocation4 + $0x1], 0  ;;  %s1404_s15 = smov 0   ;;  %s1406_s16 = smov 0  }
   0x5   :  { %s1408_s17 = smov 0   ;;  %s1410_s18 = smov 0  }
   0x6 LB: > { %s1425_s19 = sadd.s32 4294967295, %s1367_s18   ;;  %s876_s20 = sadd.s32 4294967294, %s1367_s18   ;;  %s1367_s18 = sphi %s1410_s18, %s1690_s18   ;;  %s1363_s17 = sphi %s1408_s17, %s1689_s17   ;;  %s1359_s16 = sphi %s1406_s16, %s1688_s16   ;;  %s1355_s15 = sphi %s1404_s15, %s1687_s15  }
   0x7   : > { %p41_p0 = scmp.ne.s32.totalorder %s1359_s16, %s1355_s15  ;;  %p1671_p1 = scmp.eq.s32.totalorder %s1425_s19, 0 }
   0x8   : > { %p134_p3 = scmp.eq.s32.totalorder %s876_s20, 1  ;;  %p877_p5 = scmp.ge.s32.totalorder %s1367_s18, 1 }
   0x9   : > { %p1434_p4 = por %p1671_p1, %p41_p0  ;;  %p141_p7 = scmp.lt.s32.totalorder %s1367_s18, 3 }
   0xa   : > { %p1439_p6 = por %p134_p3, %p41_p0  ;;  %s1369_s24 = smov [#allocation5]  }
   0xb   : > { %s1674_s21 = scalar_select %p1434_p4, 1, 0 }
   0xc   : > { %s1675_s22 = scalar_select %p1439_p6, 1, 0 }
   0xd   : > { %p1444_p8 = pnand %p877_p5, %p141_p7  ;;  %s153_s25 = sshll.u32 %s1369_s24, 4  ;;  %s1448_s25 = int_to_ptr.vmem [resolvable:$true] %s153_s25 }
   0xe   : > { %s1370_s27 = smov [#allocation7]   ;;  %s1211_s5 = scalar_lea.hbm %s1667_s1, 2048 }
   0xf   : > { %p1126_p9 = pneg %p1444_p8  ;;  %s166_s28 = sshll.u32 %s1370_s27, 4  ;;  %s1459_s28 = int_to_ptr.vmem [resolvable:$true] %s166_s28 }
  0x10   : > { %p1212_p12 = scmp.ne.s32.totalorder %s1667_s1, %s1211_s5  ;;  %p1218_p5 = scmp.lt.u32.totalorder %s1211_s5, %s1667_s1 }
  0x11   : > { %p1455_p11 = pnand %p1126_p9, %p1671_p1 }
  0x13   : > { %p1213_p13 = pneg %p1455_p11 }
  0x15   : > { %p1214_p0 = pnand %p1213_p13, %p1212_p12 }
  0x17   : > { %p1215_p3 = pneg %p1214_p0 }
  0x19   : > { %p1220_p7 = pnand %p1218_p5, %p1215_p3 }
  0x1b   : > { %1223 = shalt.err (!%p1220_p7)
}
  0x1c   : > { %s1224_s10 = scalar_lea.vmem %s1448_s25, 2048  ;;  %p1232_p2 = scmp.lt.s32.totalorder %s1448_s25, %s1448_s25 }
  0x1d   : > { %p1225_p9 = scmp.ne.s32.totalorder %s1448_s25, %s1224_s10  ;;  %p1233_p12 = scmp.lt.s32.totalorder %s1224_s10, %s1224_s10 }
  0x1f   : > { %p1227_p10 = pnand %p1225_p9, %p1213_p13  ;;  %p1234_p0 = por %p1233_p12, %p1232_p2 }
  0x21   : > { %p1228_p1 = pneg %p1227_p10 }
  0x23   : > { %p1235_p6 = pnand %p1234_p0, %p1228_p1 }
  0x25   : > { %1238 = shalt.err (!%p1235_p6)
}
  0x26   : > { %s1371_s11 = smov 64   ;;  %s1372_s12 = smov 4  }
  0x27   : > { %1129 = dma.hbm_to_vmem [thread:$0]  (!%p1455_p11), %s1667_s1, 2048, %s1448_s25, [#allocation6], %s1371_s11, %s1371_s11, %s1372_s12  }
  0x28   : > { %s1239_s27 = scalar_lea.hbm %s1668_s2, 1024 }
  0x29   : > { %p1240_p2 = scmp.ne.s32.totalorder %s1668_s2, %s1239_s27  ;;  %p1246_p10 = scmp.lt.u32.totalorder %s1239_s27, %s1668_s2 }
  0x2b   : > { %p1242_p1 = pnand %p1240_p2, %p1213_p13 }
  0x2d   : > { %p1243_p6 = pneg %p1242_p1 }
  0x2f   : > { %p1248_p3 = pnand %p1246_p10, %p1243_p6 }
  0x31   : > { %1251 = shalt.err (!%p1248_p3)
}
  0x32   : > { %s1252_s25 = scalar_lea.vmem %s1459_s28, 1024  ;;  %p1260_p12 = scmp.lt.s32.totalorder %s1459_s28, %s1459_s28 }
  0x33   : > { %p1253_p5 = scmp.ne.s32.totalorder %s1459_s28, %s1252_s25  ;;  %p1261_p0 = scmp.lt.s32.totalorder %s1252_s25, %s1252_s25 }
  0x35   : > { %p1255_p7 = pnand %p1253_p5, %p1213_p13  ;;  %p1262_p2 = por %p1261_p0, %p1260_p12 }
  0x37   : > { %p1256_p9 = pneg %p1255_p7 }
  0x39   : > { %p1263_p1 = pnand %p1262_p2, %p1256_p9 }
  0x3b   : > { %1266 = shalt.err (!%p1263_p1)
}
  0x3c   : > { %1132 = dma.hbm_to_vmem [thread:$0]  (!%p1455_p11), %s1668_s2, 1024, %s1459_s28, [#allocation6], %s1371_s11, %s1371_s11, %s1372_s12  }
  0x3d   : > { %s1514_s9 = sadd.s32 1, %s1367_s18   ;;  %s28_s26 = sadd.s32 1, %s1363_s17 }
  0x3e   : > { %s25_s10 = ssub.s32 %s1367_s18, %s1514_s9  ;;  %p35_p13 = scmp.ne.s32.totalorder %s1363_s17, %s1359_s16 }
  0x3f   : > { %p26_p6 = scmp.eq.s32.totalorder %s25_s10, 0  ;;  %p36_p10 = scmp.eq.s32.totalorder %s1367_s18, 0 }
  0x40   : > { %p1678_p3 = scmp.eq.s32.totalorder %s1425_s19, 1  ;;  %p1143_p7 = scmp.lt.s32.totalorder %s1367_s18, 2 }
  0x41   : > { %s1530_s14 = scalar_select %p26_p6, %s1363_s17, %s28_s26  }
  0x42   : > { %p1524_p5 = por %p1678_p3, %p35_p13  ;;  %p37_p9 = por %p36_p10, %p35_p13 }
  0x43   : > { %s183_s20 = sand.u32 1, %s1363_s17   ;;  %s937_s28 = sshll.u32 %s1367_s18, 10 }
  0x44   : > { %s1679_s13 = scalar_select %p1524_p5, 1, 0 }
  0x45   : > { %s881_s24 = sshll.u32 %s183_s20, 6  ;;  %s1537_s27 = scalar_lea.hbm %s1666_s0, %s937_s28 }
  0x46   : > { %s187_s29 = scalar_lea.vmem [#allocation2], %s881_s24  ;;  %p1541_p11 = pnand %p1143_p7, %p37_p9 }
  0x47   : > { %s195_s30 = sshll.u32 %s187_s29, 4  ;;  %s1545_s6 = scalar_lea.sflag [#allocation3], %s183_s20  ;;  %s1539_s30 = int_to_ptr.vmem [resolvable:$true] %s195_s30 }
  0x48   : > { %s1267_s25 = scalar_lea.hbm %s1537_s27, 1024  ;;  %p1269_p0 = pneg %p1541_p11 }
  0x49   : > { %p1268_p12 = scmp.ne.s32.totalorder %s1537_s27, %s1267_s25  ;;  %s1272_s26 = scalar_lea.hbm %s1666_s0, 2048 }
  0x4a   : > { %p1273_p13 = scmp.lt.u32.totalorder %s1537_s27, %s1666_s0  ;;  %p1274_p6 = scmp.lt.u32.totalorder %s1272_s26, %s1267_s25 }
  0x4b   : > { %p1270_p2 = pnand %p1269_p0, %p1268_p12  ;;  %p1276_p3 = scmp.lt.u32.totalorder %s1267_s25, %s1537_s27 }
  0x4c   : > { %p1275_p10 = por %p1274_p6, %p1273_p13 }
  0x4d   : > { %p1271_p1 = pneg %p1270_p2 }
  0x4e   : > { %p1277_p7 = por %p1276_p3, %p1275_p10 }
  0x50   : > { %p1278_p9 = pnand %p1277_p7, %p1271_p1 }
  0x52   : > { %1281 = shalt.err (!%p1278_p9)
}
  0x53   : > { %s1282_s20 = scalar_lea.vmem %s1539_s30, 1024  ;;  %s1373_s28 = smov [#allocation2]  }
  0x54   : > { %p1283_p12 = scmp.ne.s32.totalorder %s1539_s30, %s1282_s20  ;;  %s1287_s11 = sshll.u32 %s1373_s28, 4  ;;  %s1288_s11 = int_to_ptr.vmem [resolvable:$false] %s1287_s11 }
  0x55   : > { %s1289_s12 = scalar_lea.vmem %s1288_s11, 2048  ;;  %p1290_p4 = scmp.lt.s32.totalorder %s1539_s30, %s1288_s11 }
  0x56   : > { %p1285_p2 = pnand %p1283_p12, %p1269_p0  ;;  %p1291_p13 = scmp.lt.s32.totalorder %s1289_s12, %s1282_s20 }
  0x58   : > { %p1286_p5 = pneg %p1285_p2  ;;  %p1292_p6 = por %p1291_p13, %p1290_p4 }
  0x5a   : > { %p1293_p10 = pnand %p1292_p6, %p1286_p5 }
  0x5c   : > { %1296 = shalt.err (!%p1293_p10)
}
  0x5d   : > { %s1374_s29 = smov 256   ;;  %s1375_s25 = smov 16  }
  0x5e   : > { %1136 = dma.hbm_to_vmem [thread:$0]  (!%p1541_p11), %s1537_s27, 1024, %s1539_s30, %s1545_s6, %s1374_s29, %s1374_s29, %s1375_s25  }
  0x5f   : > { %207 = sbr.rel (%p1444_p8) target bundleno = 650 (0x28a), region = 36  ;;  %s1576_s7 = sand.u32 (!%p1444_p8), 1, %s1359_s16  }
  0x60   : > { %s886_s8 = sshll.u32 (!%p1444_p8), %s1576_s7, 6  ;;  %s210_s26 = scalar_lea.sflag (!%p1444_p8), [#allocation3], %s1576_s7 }
  0x61   : > { %s1582_s10 = scalar_lea.vmem (!%p1444_p8), [#allocation2], %s886_s8  ;;  %p1681_p4 = scmp.ne.s32.totalorder (!%p1444_p8), %s1674_s21, 0 }
  0x66   : > { %1342 = dma.done.wait (%p1681_p4), %s210_s26, 1024  }
  0x67   : > { %1344 = vsyncadd (%p1681_p4), %s210_s26, 4294966272  ;;  %p1682_p5 = scmp.eq.s32.totalorder %s1425_s19, 0 }
  0x69   : > { %1346 = dma.done.wait (%p1682_p5), [#allocation6], 3072   ;;  %p1683_p8 = pmov %p1682_p5 }
  0x6a   : > { %v1187_v0 = vld [vmem:[#allocation5 + $0x40] sm:$0xff]   ;;  %v1189_v2 = vld [vmem:[#allocation5 + $0x48] sm:$0xff]   ;;  %v1191_v4 = vld [vmem:[#allocation5 + $0x50] sm:$0xff]   ;;  %s1605_s27 = scalar_lea.vmem [#allocation8], %s886_s8  ;;  %s954_s5 = sshll.u32 %s1425_s19, 10 }
  0x6b   : > { %1348 = vsyncadd (%p1683_p8), [#allocation6], 4294964224  ;;  %v1188_v1 = vld [vmem:[#allocation5] sm:$0xff]   ;;  %1002 = vmatprep.subr.bf16.mxu0 %v1187_v0  ;;  %v1190_v3 = vld [vmem:[#allocation5 + $0x8] sm:$0xff]   ;;  %s784_s30 = sshll.u32 %s1605_s27, 4  ;;  %s1620_s20 = scalar_lea.hbm %s1670_s4, %s954_s5  ;;  %s1615_s30 = int_to_ptr.vmem [resolvable:$true] %s784_s30 }
  0x6c   : > { %1003 = vmatpush3.bf16.msra.mxu0 %v1188_v1  ;;  %v1192_v5 = vld [vmem:[#allocation5 + $0x10] sm:$0xff]   ;;  %v1193_v6 = vld [vmem:[#allocation5 + $0x58] sm:$0xff]   ;;  %v1195_v8 = vld [vmem:[#allocation5 + $0x60] sm:$0xff]   ;;  %s771_s28 = scalar_lea.sflag [#allocation4], %s1576_s7  ;;  %s1297_s19 = scalar_lea.vmem %s1615_s30, 1024 }
  0x6d   : > { %1004 = vmatprep.subr.bf16.mxu0 %v1189_v2  ;;  %v1194_v7 = vld [vmem:[#allocation5 + $0x18] sm:$0xff]   ;;  %v1196_v9 = vld [vmem:[#allocation5 + $0x20] sm:$0xff]   ;;  %v1197_v10 = vld [vmem:[#allocation5 + $0x68] sm:$0xff]   ;;  %p1298_p11 = scmp.ne.s32.totalorder %s1615_s30, %s1297_s19  ;;  %p1684_p0 = scmp.ne.s32.totalorder %s1679_s13, 0 }
  0x6e   : > { %v250_v11 = vld [vmem:[%s1582_s10 + $0x8] sm:$0xff]  ;;  %v1199_v14 = vld [vmem:[#allocation5 + $0x70] sm:$0xff]   ;;  %v1203_v15 = vld [vmem:[#allocation7] sm:$0xff]   ;;  %s1376_s11 = smov [#allocation8]  }
  0x6f   : > { %v258_v12 = vunpack.c.l.s8.bf16 %v250_v11  ;;  %v1198_v13 = vld [vmem:[#allocation5 + $0x28] sm:$0xff]   ;;  %v1200_v17 = vld [vmem:[#allocation5 + $0x30] sm:$0xff]   ;;  %1082 = vmatprep.subr.bf16.mxu1 %v1203_v15  ;;  %v1201_v18 = vld [vmem:[#allocation5 + $0x78] sm:$0xff]   ;;  %v260_v24 = vunpack.c.h.s8.bf16 %v250_v11  ;;  %p1299_p1 = pnand %p1298_p11, %p1684_p0  ;;  %s1301_s12 = sshll.u32 %s1376_s11, 4  ;;  %s1302_s12 = int_to_ptr.vmem [resolvable:$false] %s1301_s12 }
  0x70   : > { %1005 = vmatpush3.bf16.msra.mxu0 %v1190_v3  ;;  %v1204_v16 = vld [vmem:[#allocation7 + $0x8] sm:$0xff]   ;;  %1083 = vmatpush3.bf16.msra.mxu1 %v1203_v15  ;;  %v1205_v19 = vld [vmem:[#allocation7 + $0x10] sm:$0xff]   ;;  %v1202_v20 = vld [vmem:[#allocation5 + $0x38] sm:$0xff]   ;;  %s1303_s29 = scalar_lea.vmem %s1302_s12, 2048  ;;  %p1304_p7 = scmp.lt.s32.totalorder %s1615_s30, %s1302_s12 }
  0x71   : > { %1006 = vmatprep.subr.bf16.mxu0 %v1191_v4  ;;  %433 = vmatprep.mubr.bf16.mxu0 %v258_v12  ;;  %v249_v21 = vld [vmem:[%s1582_s10] sm:$0xff]  ;;  %v1206_v22 = vld [vmem:[#allocation7 + $0x18] sm:$0xff]   ;;  %v251_v28 = vld [vmem:[%s1582_s10 + $0x10] sm:$0xff]  ;;  %p1300_p3 = pneg %p1299_p1  ;;  %p1305_p9 = scmp.lt.s32.totalorder %s1303_s29, %s1297_s19 }
  0x72   : > { %1084 = vmatprep.subr.bf16.mxu1 %v1204_v16  ;;  %v257_v23 = vunpack.c.l.s8.bf16 %v249_v21  ;;  %v252_v25 = vld [vmem:[%s1582_s10 + $0x18] sm:$0xff]  ;;  %v259_v26 = vunpack.c.h.s8.bf16 %v249_v21  ;;  %v261_v29 = vunpack.c.l.s8.bf16 %v251_v28  ;;  %v254_v31 = vld [vmem:[%s1582_s10 + $0x28] sm:$0xff]  ;;  %v263_v32 = vunpack.c.h.s8.bf16 %v251_v28  ;;  %v253_v34 = vld [vmem:[%s1582_s10 + $0x20] sm:$0xff] }
  0x73   : > { %v262_v27 = vunpack.c.l.s8.bf16 %v252_v25  ;;  %v264_v30 = vunpack.c.h.s8.bf16 %v252_v25  ;;  %v266_v33 = vunpack.c.l.s8.bf16 %v254_v31  ;;  %v265_v35 = vunpack.c.l.s8.bf16 %v253_v34  ;;  %v256_v37 = vld [vmem:[%s1582_s10 + $0x38] sm:$0xff]  ;;  %v255_v40 = vld [vmem:[%s1582_s10 + $0x30] sm:$0xff]  ;;  %v1207_v44 = vld [vmem:[#allocation7 + $0x20] sm:$0xff]   ;;  %p1306_p12 = por %p1305_p9, %p1304_p7 }
  0x74   : > { %1007 = vmatpush3.bf16.msra.mxu0 %v1192_v5  ;;  %1085 = vmatpush3.bf16.msra.mxu1 %v1204_v16  ;;  %v268_v36 = vunpack.c.h.s8.bf16 %v254_v31  ;;  %v267_v38 = vunpack.c.h.s8.bf16 %v253_v34  ;;  %v270_v39 = vunpack.c.l.s8.bf16 %v256_v37  ;;  %v269_v41 = vunpack.c.l.s8.bf16 %v255_v40  ;;  %v1208_v45 = vld [vmem:[#allocation7 + $0x28] sm:$0xff]   ;;  %v1209_v46 = vld [vmem:[#allocation7 + $0x30] sm:$0xff]   ;;  %v1210_v47 = vld [vmem:[#allocation7 + $0x38] sm:$0xff]  }
  0x75   : > { %1008 = vmatprep.subr.bf16.mxu0 %v1193_v6  ;;  %1086 = vmatprep.subr.bf16.mxu1 %v1205_v19  ;;  %v272_v42 = vunpack.c.h.s8.bf16 %v256_v37  ;;  %v271_v43 = vunpack.c.h.s8.bf16 %v255_v40  ;;  %v906_v40 = vld [vmem:[%s1669_s3] ss:$0 sm:$0xff]  ;;  %p1307_p2 = pnand %p1306_p12, %p1300_p3 }
  0x78   : > { %1009 = vmatpush3.bf16.msra.mxu0 %v1194_v7  ;;  %1087 = vmatpush3.bf16.msra.mxu1 %v1205_v19 }
  0x79   : > { %1010 = vmatprep.subr.bf16.mxu0 %v1195_v8  ;;  %1088 = vmatprep.subr.bf16.mxu1 %v1206_v22 }
  0x7c   : > { %1011 = vmatpush3.bf16.msra.mxu0 %v1196_v9  ;;  %1089 = vmatpush3.bf16.msra.mxu1 %v1206_v22 }
  0x7d   : > { %1012 = vmatprep.subr.bf16.mxu0 %v1197_v10  ;;  %1090 = vmatprep.subr.bf16.mxu1 %v1207_v44 }
  0x80   : > { %1013 = vmatpush3.bf16.msra.mxu0 %v1198_v13  ;;  %1091 = vmatpush3.bf16.msra.mxu1 %v1207_v44 }
  0x81   : > { %1014 = vmatprep.subr.bf16.mxu0 %v1199_v14  ;;  %1092 = vmatprep.subr.bf16.mxu1 %v1208_v45 }
  0x84   : > { %1015 = vmatpush3.bf16.msra.mxu0 %v1200_v17  ;;  %1093 = vmatpush3.bf16.msra.mxu1 %v1208_v45 }
  0x85   : > { %1016 = vmatprep.subr.bf16.mxu0 %v1201_v18  ;;  %1094 = vmatprep.subr.bf16.mxu1 %v1209_v46 }
  0x88   : > { %1017 = vmatpush3.bf16.msra.mxu0 %v1202_v20  ;;  %1095 = vmatpush3.bf16.msra.mxu1 %v1209_v46 }
  0x89   : > { %1096 = vmatprep.subr.bf16.mxu1 %v1210_v47 }
  0x8b   : > { %434 = vmatmul.mubr.bf16.vlgmr.msra.gmra.mrb[0].mxu0 %v257_v23 }
  0x8c   : > { %441 = vmatprep.mubr.bf16.mxu0 %v260_v24  ;;  %1097 = vmatpush3.bf16.msra.mxu1 %v1210_v47 }
  0x93   : > { %442 = vmatmul.mubr.bf16.gmra.mrb[4].mxu0 %v259_v26 }
  0x94   : > { %449 = vmatprep.mubr.bf16.mxu0 %v262_v27 }
  0x9b   : > { %450 = vmatmul.mubr.bf16.gmra.mrb[8].mxu0 %v261_v29 }
  0x9c   : > { %457 = vmatprep.mubr.bf16.mxu0 %v264_v30 }
  0xa3   : > { %458 = vmatmul.mubr.bf16.gmra.mrb[12].mxu0 %v263_v32 }
  0xa4   : > { %465 = vmatprep.mubr.bf16.mxu0 %v266_v33 }
  0xab   : > { %466 = vmatmul.mubr.bf16.gmra.mrb[16].mxu0 %v265_v35 }
  0xac   : > { %473 = vmatprep.mubr.bf16.mxu0 %v268_v36 }
  0xb3   : > { %474 = vmatmul.mubr.bf16.gmra.mrb[20].mxu0 %v267_v38 }
  0xb4   : > { %481 = vmatprep.mubr.bf16.mxu0 %v270_v39 }
  0xbb   : > { %482 = vmatmul.mubr.bf16.gmra.mrb[24].mxu0 %v269_v41 }
  0xbc   : > { %489 = vmatprep.mubr.bf16.mxu0 %v272_v42 }
  0xc3   : > { %490 = vmatmul.mubr.bf16.gmra.mrb[28].mxu0 %v271_v43 }
 0x15e   : > { %v1018_v48 = vpop.f32.mrb[0].mxu0 }
 0x15f   : > { %v1019_v49 = vpop.f32.mrb[1].mxu0 }
 0x160   : > { %v1020_v50 = vadd.f32 %v1019_v49, %v1018_v48  ;;  %v1021_v51 = vpop.f32.mrb[2].mxu0 }
 0x161   : > { %v1022_v52 = vpop.f32.mrb[3].mxu0 }
 0x162   : > { %v1023_v53 = vadd.f32 %v1022_v52, %v1021_v51 }
 0x164   : > { %v498_v54 = vpack.c.bf16 %v1023_v53, %v1020_v50 }
 0x166   : > { %v1024_v55 = vpop.f32.mrb[4].mxu0  ;;  %1098 = vmatprep.mubr.bf16.mxu1 %v498_v54 }
 0x167   : > { %v1025_v56 = vpop.f32.mrb[5].mxu0 }
 0x168   : > { %v1026_v57 = vadd.f32 %v1025_v56, %v1024_v55  ;;  %v1027_v58 = vpop.f32.mrb[6].mxu0 }
 0x169   : > { %v1028_v59 = vpop.f32.mrb[7].mxu0 }
 0x16a   : > { %v1029_v60 = vadd.f32 %v1028_v59, %v1027_v58 }
 0x16c   : > { %v499_v61 = vpack.c.bf16 %v1029_v60, %v1026_v57 }
 0x16e   : > { %v1030_v62 = vpop.f32.mrb[8].mxu0  ;;  %1099 = vmatmul.mubr.bf16.vlgmr.msra.gmra.mrb[0].mxu1 %v499_v61 }
 0x16f   : > { %v1031_v63 = vpop.f32.mrb[9].mxu0 }
 0x170   : > { %v1032_v0 = vadd.f32 %v1031_v63, %v1030_v62  ;;  %v1033_v1 = vpop.f32.mrb[10].mxu0 }
 0x171   : > { %v1034_v2 = vpop.f32.mrb[11].mxu0 }
 0x172   : > { %v1035_v3 = vadd.f32 %v1034_v2, %v1033_v1 }
 0x174   : > { %v500_v4 = vpack.c.bf16 %v1035_v3, %v1032_v0 }
 0x176   : > { %v1036_v5 = vpop.f32.mrb[12].mxu0  ;;  %1102 = vmatprep.mubr.bf16.mxu1 %v500_v4 }
 0x177   : > { %v1037_v6 = vpop.f32.mrb[13].mxu0 }
 0x178   : > { %v1038_v7 = vadd.f32 %v1037_v6, %v1036_v5  ;;  %v1039_v8 = vpop.f32.mrb[14].mxu0 }
 0x179   : > { %v1040_v9 = vpop.f32.mrb[15].mxu0 }
 0x17a   : > { %v1041_v10 = vadd.f32 %v1040_v9, %v1039_v8 }
 0x17c   : > { %v501_v11 = vpack.c.bf16 %v1041_v10, %v1038_v7 }
 0x17e   : > { %v1042_v12 = vpop.f32.mrb[16].mxu0  ;;  %1103 = vmatmul.mubr.bf16.gmra.mrb[4].mxu1 %v501_v11 }
 0x17f   : > { %v1043_v13 = vpop.f32.mrb[17].mxu0 }
 0x180   : > { %v1044_v14 = vadd.f32 %v1043_v13, %v1042_v12  ;;  %v1045_v15 = vpop.f32.mrb[18].mxu0 }
 0x181   : > { %v1046_v16 = vpop.f32.mrb[19].mxu0 }
 0x182   : > { %v1047_v17 = vadd.f32 %v1046_v16, %v1045_v15 }
 0x184   : > { %v502_v18 = vpack.c.bf16 %v1047_v17, %v1044_v14 }
 0x186   : > { %v1048_v19 = vpop.f32.mrb[20].mxu0  ;;  %1106 = vmatprep.mubr.bf16.mxu1 %v502_v18 }
 0x187   : > { %v1049_v20 = vpop.f32.mrb[21].mxu0 }
 0x188   : > { %v1050_v21 = vadd.f32 %v1049_v20, %v1048_v19  ;;  %v1051_v22 = vpop.f32.mrb[22].mxu0 }
 0x189   : > { %v1052_v23 = vpop.f32.mrb[23].mxu0 }
 0x18a   : > { %v1053_v24 = vadd.f32 %v1052_v23, %v1051_v22 }
 0x18c   : > { %v503_v25 = vpack.c.bf16 %v1053_v24, %v1050_v21 }
 0x18e   : > { %v1054_v26 = vpop.f32.mrb[24].mxu0  ;;  %1107 = vmatmul.mubr.bf16.gmra.mrb[8].mxu1 %v503_v25 }
 0x18f   : > { %v1055_v27 = vpop.f32.mrb[25].mxu0 }
 0x190   : > { %v1056_v28 = vadd.f32 %v1055_v27, %v1054_v26  ;;  %v1057_v29 = vpop.f32.mrb[26].mxu0 }
 0x191   : > { %v1058_v30 = vpop.f32.mrb[27].mxu0 }
 0x192   : > { %v1059_v31 = vadd.f32 %v1058_v30, %v1057_v29 }
 0x194   : > { %v504_v32 = vpack.c.bf16 %v1059_v31, %v1056_v28 }
 0x196   : > { %v1060_v33 = vpop.f32.mrb[28].mxu0  ;;  %1110 = vmatprep.mubr.bf16.mxu1 %v504_v32 }
 0x197   : > { %v1061_v34 = vpop.f32.mrb[29].mxu0 }
 0x198   : > { %v1062_v35 = vadd.f32 %v1061_v34, %v1060_v33  ;;  %v1063_v36 = vpop.f32.mrb[30].mxu0 }
 0x199   : > { %v1064_v37 = vpop.f32.mrb[31].mxu0 }
 0x19a   : > { %v1065_v38 = vadd.f32 %v1064_v37, %v1063_v36 }
 0x19c   : > { %v505_v39 = vpack.c.bf16 %v1065_v38, %v1062_v35 }
 0x19e   : > { %1111 = vmatmul.mubr.bf16.gmra.mrb[12].mxu1 %v505_v39 }
 0x241   : > { %v1100_v41 = vpop.f32.mrb[0].mxu1 }
 0x242   : > { %v620_v42 = vadd.f32 %v1100_v41, %v906_v40  ;;  %v611_v43 = vpop.f32.mrb[1].mxu1 }
 0x243   : > { %v612_v44 = vadd.f32 %v906_v40, %v611_v43  ;;  %v1101_v45 = vpop.f32.mrb[2].mxu1 }
 0x244   : > { %v623_v46 = vadd.f32 %v1101_v45, %v906_v40  ;;  %v614_v47 = vpop.f32.mrb[3].mxu1  ;;  %v676_v49 = vmax.f32 %v620_v42, 0.0 }
 0x245   : > { %v615_v48 = vadd.f32 %v906_v40, %v614_v47  ;;  %v674_v51 = vmax.f32 %v612_v44, 0.0 }
 0x246   : > { %v677_v50 = vmax.f32 %v623_v46, 0.0 }
 0x247   : > { %v675_v52 = vmax.f32 %v615_v48, 0.0 }
 0x248   : > { %v963_v53 = vpack.c.bf16 %v677_v50, %v676_v49 }
 0x249   : > { %v958_v54 = vpack.c.bf16 %v675_v52, %v674_v51 }
 0x24a   : > { %995 = vst [vmem:[%s1605_s27 + $0x8] sm:$0xff] %v963_v53  }
 0x24b   : > { %959 = vst [vmem:[%s1605_s27] sm:$0xff] %v958_v54  }
 0x251   : > { %v1104_v55 = vpop.f32.mrb[4].mxu1 }
 0x252   : > { %v636_v56 = vadd.f32 %v1104_v55, %v906_v40  ;;  %v627_v57 = vpop.f32.mrb[5].mxu1 }
 0x253   : > { %v628_v58 = vadd.f32 %v906_v40, %v627_v57  ;;  %v1105_v59 = vpop.f32.mrb[6].mxu1 }
 0x254   : > { %v639_v60 = vadd.f32 %v1105_v59, %v906_v40  ;;  %v630_v61 = vpop.f32.mrb[7].mxu1  ;;  %v680_v63 = vmax.f32 %v636_v56, 0.0 }
 0x255   : > { %v631_v62 = vadd.f32 %v906_v40, %v630_v61  ;;  %v678_v1 = vmax.f32 %v628_v58, 0.0 }
 0x256   : > { %v681_v0 = vmax.f32 %v639_v60, 0.0 }
 0x257   : > { %v679_v2 = vmax.f32 %v631_v62, 0.0 }
 0x258   : > { %v973_v3 = vpack.c.bf16 %v681_v0, %v680_v63 }
 0x259   : > { %v968_v4 = vpack.c.bf16 %v679_v2, %v678_v1 }
 0x25a   : > { %997 = vst [vmem:[%s1605_s27 + $0x18] sm:$0xff] %v973_v3  }
 0x25b   : > { %996 = vst [vmem:[%s1605_s27 + $0x10] sm:$0xff] %v968_v4  }
 0x261   : > { %v1108_v5 = vpop.f32.mrb[8].mxu1 }
 0x262   : > { %v652_v6 = vadd.f32 %v1108_v5, %v906_v40  ;;  %v643_v7 = vpop.f32.mrb[9].mxu1 }
 0x263   : > { %v644_v8 = vadd.f32 %v906_v40, %v643_v7  ;;  %v1109_v9 = vpop.f32.mrb[10].mxu1 }
 0x264   : > { %v655_v10 = vadd.f32 %v1109_v9, %v906_v40  ;;  %v646_v11 = vpop.f32.mrb[11].mxu1  ;;  %v684_v13 = vmax.f32 %v652_v6, 0.0 }
 0x265   : > { %v647_v12 = vadd.f32 %v906_v40, %v646_v11  ;;  %v682_v15 = vmax.f32 %v644_v8, 0.0 }
 0x266   : > { %v685_v14 = vmax.f32 %v655_v10, 0.0 }
 0x267   : > { %v683_v16 = vmax.f32 %v647_v12, 0.0 }
 0x268   : > { %v983_v17 = vpack.c.bf16 %v685_v14, %v684_v13 }
 0x269   : > { %v978_v18 = vpack.c.bf16 %v683_v16, %v682_v15 }
 0x26a   : > { %999 = vst [vmem:[%s1605_s27 + $0x28] sm:$0xff] %v983_v17  }
 0x26b   : > { %998 = vst [vmem:[%s1605_s27 + $0x20] sm:$0xff] %v978_v18  }
 0x271   : > { %v1112_v19 = vpop.f32.mrb[12].mxu1 }
 0x272   : > { %v668_v20 = vadd.f32 %v1112_v19, %v906_v40  ;;  %v659_v21 = vpop.f32.mrb[13].mxu1 }
 0x273   : > { %v660_v22 = vadd.f32 %v906_v40, %v659_v21  ;;  %v1113_v23 = vpop.f32.mrb[14].mxu1 }
 0x274   : > { %v671_v24 = vadd.f32 %v1113_v23, %v906_v40  ;;  %v662_v25 = vpop.f32.mrb[15].mxu1  ;;  %v688_v27 = vmax.f32 %v668_v20, 0.0 }
 0x275   : > { %v663_v26 = vadd.f32 %v906_v40, %v662_v25  ;;  %v686_v29 = vmax.f32 %v660_v22, 0.0 }
 0x276   : > { %v689_v28 = vmax.f32 %v671_v24, 0.0 }
 0x277   : > { %v687_v30 = vmax.f32 %v663_v26, 0.0 }
 0x278   : > { %v993_v31 = vpack.c.bf16 %v689_v28, %v688_v27 }
 0x279   : > { %v988_v32 = vpack.c.bf16 %v687_v30, %v686_v29 }
 0x27a   : > { %1001 = vst [vmem:[%s1605_s27 + $0x38] sm:$0xff] %v993_v31  }
 0x27b   : > { %1000 = vst [vmem:[%s1605_s27 + $0x30] sm:$0xff] %v988_v32  }
 0x27c   : > { %1310 = shalt.err (!%p1307_p2)
}
 0x27d   : > { %s1311_s25 = scalar_lea.hbm %s1620_s20, 1024  ;;  %s1315_s10 = scalar_lea.hbm %s1670_s4, 2048 }
 0x27e   : > { %p1312_p13 = scmp.ne.s32.totalorder %s1620_s20, %s1311_s25  ;;  %p1316_p4 = scmp.lt.u32.totalorder %s1620_s20, %s1670_s4 }
 0x27f   : > { %p1317_p5 = scmp.lt.u32.totalorder %s1315_s10, %s1311_s25  ;;  %p1319_p11 = scmp.lt.u32.totalorder %s1311_s25, %s1620_s20 }
 0x280   : > { %p1313_p6 = pnand %p1312_p13, %p1684_p0 }
 0x281   : > { %p1318_p8 = por %p1317_p5, %p1316_p4 }
 0x282   : > { %p1314_p10 = pneg %p1313_p6 }
 0x283   : > { %p1320_p1 = por %p1319_p11, %p1318_p8 }
 0x285   : > { %p1321_p3 = pnand %p1320_p1, %p1314_p10 }
 0x287   : > { %1324 = shalt.err (!%p1321_p3)
}
 0x288   : > { %s1377_s27 = smov 64   ;;  %s1378_s5 = smov 4  }
 0x289   : > { %1124 = dma.vmem_to_hbm [thread:$0]  (%p1684_p0), %s1615_s30, 1024, %s1620_s20, %s771_s28, %s1377_s27, %s1377_s27, %s1378_s5  }
 0x28a PF: > { %s799_s6 = sand.u32 1, %s1355_s15   ;;  %p1685_p7 = scmp.ne.s32.totalorder %s1675_s22, 0 }
 0x28b   : > { %p1686_p9 = scmp.ge.s32.totalorder %s1367_s18, 2  ;;  %s800_s24 = scalar_lea.sflag [#allocation4], %s799_s6 }
 0x28d   : > { %p1138_p12 = pnand %p1686_p9, %p1685_p7 }
 0x28f   : > { %1350 = dma.done.wait (!%p1138_p12), %s800_s24, 1024  }
 0x290   : > { %1352 = vsyncadd (!%p1138_p12), %s800_s24, 4294966272  ;;  %p18_p2 = scmp.ge.s32.totalorder %s1514_s9, 4   ;;  %s1687_s15 = smov %s1359_s16 }
 0x291   : > { %s1688_s16 = smov %s1363_s17  ;;  %s1689_s17 = smov %s1530_s14 }
 0x292   : > { %s1690_s18 = smov %s1514_s9  ;;  %20 = sbr.rel (!%p18_p2) target bundleno = 6 (0x6), region = 89 }
 0x299   :  { %805 = vsyncpa [#allocation3], 1 }
 0x29a   :  { %807 = vsyncpa [#allocation3 + $0x1], 1 }
 0x29b   :  { %808 = vsyncpa [#allocation6], 1 }
 0x29c   :  { %809 = vsyncpa [#allocation4], 1 }
 0x29d   :  { %811 = vsyncpa [#allocation4 + $0x1], 1 }

</bundles_post_ra>
